<compile_context>
chip_gen: v7x
topology: tpu7x:2x2x1
jax: 0.10.0
libtpu: 0.0.40
codegen_flags: <defaults>
</compile_context>

<pallas_src>
import functools

import jax
import jax.numpy as jnp
from jax import lax
from jax.experimental import pallas as pl
from jax.experimental.pallas import tpu as pltpu

LANES = 128
TARGET_TILE_ROWS = 2048   # (2048, 128) f32 tile = 1 MiB per input per buffer
NUM_CORES = 2             # parallel axis: sharded across TCs on v7x, cheap elsewhere


def _round_up(x, m):
    return ((x + m - 1) // m) * m


def _ipow(x, n):
    """x ** n; integer n lowers to VALU multiplies instead of EUP exp/log pow."""
    if isinstance(n, int):
        return lax.integer_pow(x, n)
    return x ** n


def _focal_terms(x, t, alpha, beta):
    x = x.astype(jnp.float32)
    t = t.astype(jnp.float32)
    center_id = (t == 1.0).astype(jnp.float32)
    other_id = 1.0 - center_id
    center_loss = -center_id * _ipow(1.0 - x, alpha) * jnp.log(x + 1e-14)
    other_loss = (-other_id * _ipow(1.0 - t, beta) * _ipow(x, alpha)
                  * jnp.log(1.0 - x + 1e-14))
    return center_loss + other_loss


def _sum_kernel(x_ref, t_ref, out_ref, acc_ref, *,
                alpha, beta, tile_rows, valid_rows, needs_mask):
    c = pl.program_id(0)          # core (parallel) axis
    i = pl.program_id(1)          # reduction (arbitrary) axis

    @pl.when(i == 0)
    def _():
        acc_ref[...] = jnp.zeros_like(acc_ref)

    loss = _focal_terms(x_ref[...], t_ref[...], alpha, beta)

    if needs_mask:
        # Logical (unclamped) tile index -> global row index of each element.
        blk = c * pl.num_programs(1) + i
        row = (lax.broadcasted_iota(jnp.int32, (tile_rows, LANES), 0)
               + blk * tile_rows)
        loss = jnp.where(row < valid_rows, loss, 0.0)

    # Vector accumulation: pure vreg adds (VALU slack under a mem-bound roofline).
    acc_ref[...] += loss.reshape(-1, 8, LANES).sum(axis=0)

    @pl.when(i == pl.num_programs(1) - 1)
    def _():
        out_ref[0] = acc_ref[...]


def _elementwise_kernel(x_ref, t_ref, o_ref, *, alpha, beta):
    o_ref[...] = _focal_terms(x_ref[...], t_ref[...], alpha, beta)


def _to_lane_slab(a):
    """Flatten to (rows, LANES) in native dtype; pads only a <128-elem tail."""
    total = a.size
    rows = pl.cdiv(total, LANES)
    flat = a.reshape(-1)
    pad = rows * LANES - total
    if pad:
        flat = jnp.pad(flat, (0, pad))   # zeros contribute exactly 0 loss
    return flat.reshape(rows, LANES), rows


def heatmap_loss(inputs, targets, alpha=2, beta=4, reduction="mean"):
    """Pallas implementation of HeatmapLoss.forward.

    reduction in {'mean', 'sum'} -> scalar sum(loss)/batch (matches the
    PyTorch reference); anything else -> elementwise loss tensor.
    """
    assert inputs.shape == targets.shape
    batch_size = inputs.shape[0]
    total = inputs.size

    x2d, rows = _to_lane_slab(inputs)
    t2d, _ = _to_lane_slab(targets)

    tile_rows = min(TARGET_TILE_ROWS, _round_up(rows, 16))
    n_tiles = pl.cdiv(rows, tile_rows)

    if reduction not in ("mean", "sum"):
        # reduction='none': elementwise loss tensor.
        loss2d = pl.pallas_call(
            functools.partial(_elementwise_kernel, alpha=alpha, beta=beta),
            out_shape=jax.ShapeDtypeStruct((rows, LANES), jnp.float32),
            grid_spec=pltpu.PrefetchScalarGridSpec(
                num_scalar_prefetch=0,
                grid=(n_tiles,),
                in_specs=[pl.BlockSpec((tile_rows, LANES), lambda i: (i, 0)),
                          pl.BlockSpec((tile_rows, LANES), lambda i: (i, 0))],
                out_specs=pl.BlockSpec((tile_rows, LANES), lambda i: (i, 0)),
            ),
            compiler_params=pltpu.CompilerParams(
                dimension_semantics=("parallel",)),
        )(x2d, t2d)
        return loss2d.reshape(-1)[:total].reshape(inputs.shape)

    tiles_per_core = pl.cdiv(n_tiles, NUM_CORES)
    needs_mask = (NUM_CORES * tiles_per_core * tile_rows) != rows

    def in_map(c, i):
        # Clamp so padding/duplicate tiles never DMA out of bounds; their
        # contribution is zeroed in-kernel by the (unclamped) row mask.
        return (jnp.minimum(c * tiles_per_core + i, n_tiles - 1), 0)

    kernel = functools.partial(
        _sum_kernel, alpha=alpha, beta=beta, tile_rows=tile_rows,
        valid_rows=rows, needs_mask=needs_mask)

    partials = pl.pallas_call(
        kernel,
        out_shape=jax.ShapeDtypeStruct((NUM_CORES, 8, LANES), jnp.float32),
        grid_spec=pltpu.PrefetchScalarGridSpec(
            num_scalar_prefetch=0,
            grid=(NUM_CORES, tiles_per_core),
            in_specs=[pl.BlockSpec((tile_rows, LANES), in_map),
                      pl.BlockSpec((tile_rows, LANES), in_map)],
            out_specs=pl.BlockSpec((1, 8, LANES), lambda c, i: (c, 0, 0)),
            scratch_shapes=[pltpu.VMEM((8, LANES), jnp.float32)],
        ),
        compiler_params=pltpu.CompilerParams(
            dimension_semantics=("parallel", "arbitrary")),
    )(x2d, t2d)

    total_sum = jnp.sum(partials)   # single tiny cross-lane reduce
    return total_sum / jnp.float32(batch_size)


if __name__ == "__main__":
    key = jax.random.PRNGKey(0)
    k1, k2, k3 = jax.random.split(key, 3)

    N, C, H, W = 2, 4, 16, 16  # NCHW, matching the PyTorch convention
    # Predictions in (0, 1) as a heatmap head (post-sigmoid) would produce.
    inputs = jax.nn.sigmoid(jax.random.normal(k1, (N, C, H, W), jnp.float32))
    # Gaussian-ish targets in [0, 1] with a few exact peaks == 1.0.
    targets = jax.random.uniform(k2, (N, C, H, W), jnp.float32)
    peak_mask = jax.random.uniform(k3, (N, C, H, W)) > 0.98
    targets = jnp.where(peak_mask, 1.0, targets * 0.9)

    out = heatmap_loss(inputs, targets, alpha=2, beta=4, reduction="mean")
    out = jax.block_until_ready(out)
    ref = jnp.sum(_focal_terms(inputs, targets, 2, 4)) / N
    assert jnp.allclose(out, ref, rtol=1e-5, atol=1e-5), (out, ref)

    loss_none = heatmap_loss(inputs, targets, alpha=2, beta=4, reduction="none")
    loss_none = jax.block_until_ready(loss_none)
    ref_none = _focal_terms(inputs, targets, 2, 4)
    assert jnp.allclose(loss_none, ref_none, rtol=1e-5, atol=1e-5)

    print("KERNEL_OK")
</pallas_src>

<mosaic_0001>
module attributes {stable_mosaic.version = 11 : i64} {
  func.func @_sum_kernel(%arg0: i32, %arg1: i32, %arg2: memref<16x128xf32, #tpu.memory_space<vmem>>, %arg3: memref<16x128xf32, #tpu.memory_space<vmem>>, %arg4: memref<1x8x128xf32, #tpu.memory_space<vmem>>, %arg5: memref<8x128xf32, #tpu.memory_space<vmem>>) attributes {dimension_semantics = [#tpu.dimension_semantics<parallel>, #tpu.dimension_semantics<arbitrary>], iteration_bounds = array<i64: 2, 1>, scalar_prefetch = 0 : i64, scratch_operands = 1 : i64, tpu.core_type = #tpu.core_type<tc>, window_params = [{transform_indices = @transform_0, window_bounds = array<i64: 16, 128>}, {transform_indices = @transform_1, window_bounds = array<i64: 16, 128>}, {transform_indices = @transform_2, window_bounds = array<i64: 1, 8, 128>}]} {
    %c0_i32 = arith.constant 0 : i32
    %0 = arith.cmpi eq, %arg1, %c0_i32 : i32
    %1 = arith.extui %0 : i1 to i32
    %c0_i32_0 = arith.constant 0 : i32
    %2 = arith.cmpi ne, %1, %c0_i32_0 : i32
    scf.if %2 {
      %cst_21 = arith.constant 0.000000e+00 : f32
      %55 = vector.broadcast %cst_21 : f32 to vector<8x128xf32>
      %c0_22 = arith.constant 0 : index
      %c0_23 = arith.constant 0 : index
      %56 = vector.load %arg5[%c0_22, %c0_23] : memref<8x128xf32, #tpu.memory_space<vmem>>, vector<8x128xf32>
      tpu.vector_store %arg5[%c0_22, %c0_23], %55 {strides = array<i32>} : memref<8x128xf32, #tpu.memory_space<vmem>>, vector<8x128xf32>,
    } else {
    }
    %c0 = arith.constant 0 : index
    %c0_1 = arith.constant 0 : index
    %3 = vector.load %arg2[%c0, %c0_1] : memref<16x128xf32, #tpu.memory_space<vmem>>, vector<16x128xf32>
    %c0_2 = arith.constant 0 : index
    %c0_3 = arith.constant 0 : index
    %4 = vector.load %arg3[%c0_2, %c0_3] : memref<16x128xf32, #tpu.memory_space<vmem>>, vector<16x128xf32>
    %cst = arith.constant 1.000000e+00 : f32
    %5 = vector.broadcast %cst : f32 to vector<16x128xf32>
    %6 = arith.cmpf oeq, %4, %5 : vector<16x128xf32>
    %7 = arith.extui %6 : vector<16x128xi1> to vector<16x128xi32>
    %8 = arith.sitofp %7 : vector<16x128xi32> to vector<16x128xf32>
    %cst_4 = arith.constant 1.000000e+00 : f32
    %9 = vector.broadcast %cst_4 : f32 to vector<16x128xf32>
    %10 = arith.subf %9, %8 : vector<16x128xf32>
    %cst_5 = arith.constant 0.000000e+00 : f32
    %11 = vector.broadcast %cst_5 : f32 to vector<16x128xf32>
    %12 = arith.subf %11, %8 : vector<16x128xf32>
    %cst_6 = arith.constant 1.000000e+00 : f32
    %13 = vector.broadcast %cst_6 : f32 to vector<16x128xf32>
    %14 = arith.subf %13, %3 : vector<16x128xf32>
    %15 = arith.mulf %14, %14 : vector<16x128xf32>
    %16 = arith.mulf %12, %15 : vector<16x128xf32>
    %cst_7 = arith.constant 9.99999982E-15 : f32
    %17 = vector.broadcast %cst_7 : f32 to vector<16x128xf32>
    %18 = arith.addf %3, %17 : vector<16x128xf32>
    %19 = math.log %18 : vector<16x128xf32>
    %20 = arith.mulf %16, %19 : vector<16x128xf32>
    %cst_8 = arith.constant 0.000000e+00 : f32
    %21 = vector.broadcast %cst_8 : f32 to vector<16x128xf32>
    %22 = arith.subf %21, %10 : vector<16x128xf32>
    %cst_9 = arith.constant 1.000000e+00 : f32
    %23 = vector.broadcast %cst_9 : f32 to vector<16x128xf32>
    %24 = arith.subf %23, %4 : vector<16x128xf32>
    %25 = arith.mulf %24, %24 : vector<16x128xf32>
    %26 = arith.mulf %25, %25 : vector<16x128xf32>
    %27 = arith.mulf %22, %26 : vector<16x128xf32>
    %28 = arith.mulf %3, %3 : vector<16x128xf32>
    %29 = arith.mulf %27, %28 : vector<16x128xf32>
    %cst_10 = arith.constant 1.000000e+00 : f32
    %30 = vector.broadcast %cst_10 : f32 to vector<16x128xf32>
    %31 = arith.subf %30, %3 : vector<16x128xf32>
    %cst_11 = arith.constant 9.99999982E-15 : f32
    %32 = vector.broadcast %cst_11 : f32 to vector<16x128xf32>
    %33 = arith.addf %31, %32 : vector<16x128xf32>
    %34 = math.log %33 : vector<16x128xf32>
    %35 = arith.mulf %29, %34 : vector<16x128xf32>
    %36 = arith.addf %20, %35 : vector<16x128xf32>
    %c1_i32 = arith.constant 1 : i32
    %37 = arith.muli %arg0, %c1_i32 : i32
    %38 = arith.addi %37, %arg1 : i32
    %39 = tpu.iota {dimensions = array<i32: 0>} : vector<16x128xi32>
    %c16_i32 = arith.constant 16 : i32
    %40 = arith.muli %38, %c16_i32 : i32
    %41 = vector.broadcast %40 : i32 to vector<16x128xi32>
    %42 = arith.addi %39, %41 : vector<16x128xi32>
    %c16_i32_12 = arith.constant 16 : i32
    %43 = vector.broadcast %c16_i32_12 : i32 to vector<16x128xi32>
    %44 = arith.cmpi slt, %42, %43 : vector<16x128xi32>
    %cst_13 = arith.constant 0.000000e+00 : f32
    %45 = vector.broadcast %cst_13 : f32 to vector<16x128xf32>
    %46 = arith.select %44, %36, %45 : vector<16x128xi1>, vector<16x128xf32>
    %c0_14 = arith.constant 0 : index
    %c0_15 = arith.constant 0 : index
    %47 = vector.load %arg5[%c0_14, %c0_15] : memref<8x128xf32, #tpu.memory_space<vmem>>, vector<8x128xf32>
    %48 = vector.shape_cast %46 : vector<16x128xf32> to vector<2x8x128xf32>
    %cst_16 = arith.constant dense<0.000000e+00> : vector<8x128xf32>
    %49 = vector.multi_reduction <add>, %48, %cst_16 [0] : vector<2x8x128xf32> to vector<8x128xf32>
    %50 = arith.addf %47, %49 : vector<8x128xf32>
    %c0_17 = arith.constant 0 : index
    %c0_18 = arith.constant 0 : index
    %51 = vector.load %arg5[%c0_17, %c0_18] : memref<8x128xf32, #tpu.memory_space<vmem>>, vector<8x128xf32>
    tpu.vector_store %arg5[%c0_17, %c0_18], %50 {strides = array<i32>} : memref<8x128xf32, #tpu.memory_space<vmem>>, vector<8x128xf32>,
    %c0_i32_19 = arith.constant 0 : i32
    %52 = arith.cmpi eq, %arg1, %c0_i32_19 : i32
    %53 = arith.extui %52 : i1 to i32
    %c0_i32_20 = arith.constant 0 : i32
    %54 = arith.cmpi ne, %53, %c0_i32_20 : i32
    scf.if %54 {
      %c0_21 = arith.constant 0 : index
      %c0_22 = arith.constant 0 : index
      %55 = vector.load %arg5[%c0_21, %c0_22] : memref<8x128xf32, #tpu.memory_space<vmem>>, vector<8x128xf32>
      %c0_23 = arith.constant 0 : index
      %c0_24 = arith.constant 0 : index
      %c0_25 = arith.constant 0 : index
      %56 = vector.load %arg4[%c0_23, %c0_24, %c0_25] : memref<1x8x128xf32, #tpu.memory_space<vmem>>, vector<1x8x128xf32>
      %57 = vector.shape_cast %56 : vector<1x8x128xf32> to vector<8x128xf32>
      %58 = vector.shape_cast %55 : vector<8x128xf32> to vector<1x8x128xf32>
      tpu.vector_store %arg4[%c0_23, %c0_24, %c0_25], %58 {strides = array<i32>} : memref<1x8x128xf32, #tpu.memory_space<vmem>>, vector<1x8x128xf32>,
    } else {
    }
    return
  }
  func.func @transform_0(%arg0: i32, %arg1: i32) -> (i32, i32) {
    %c1_i32 = arith.constant 1 : i32
    %0 = arith.muli %arg0, %c1_i32 : i32
    %1 = arith.addi %0, %arg1 : i32
    %c0_i32 = arith.constant 0 : i32
    %2 = arith.minsi %1, %c0_i32 : i32
    %c0_i32_0 = arith.constant 0 : i32
    %c0_i32_1 = arith.constant 0 : i32
    return %2, %c0_i32_0 : i32, i32
  }
  func.func @transform_1(%arg0: i32, %arg1: i32) -> (i32, i32) {
    %c1_i32 = arith.constant 1 : i32
    %0 = arith.muli %arg0, %c1_i32 : i32
    %1 = arith.addi %0, %arg1 : i32
    %c0_i32 = arith.constant 0 : i32
    %2 = arith.minsi %1, %c0_i32 : i32
    %c0_i32_0 = arith.constant 0 : i32
    %c0_i32_1 = arith.constant 0 : i32
    return %2, %c0_i32_0 : i32, i32
  }
  func.func @transform_2(%arg0: i32, %arg1: i32) -> (i32, i32, i32) {
    %c0_i32 = arith.constant 0 : i32
    %c0_i32_0 = arith.constant 0 : i32
    %c0_i32_1 = arith.constant 0 : i32
    return %arg0, %c0_i32, %c0_i32_0 : i32, i32, i32
  }
}

</mosaic_0001>

<bundles_post_ra>
// kernel: tpu_custom_call.1
= control target key start
LH: loop header
LB: loop body
LE: loop exit
PB: predicated region body
PF: predicated region fallthrough
CT: control target
= control target key end

     0   :  { %7 = vsyncpa [#allocation4], 0  ;;  %s956_s0 = inlined_call_operand.hbm [shape: f32[16,128], index: 0, kind: input, shape index: {}]   ;;  %s957_s1 = inlined_call_operand.hbm [shape: f32[16,128], index: 1, kind: input, shape index: {}]   ;;  %s958_s2 = inlined_call_operand.hbm [shape: f32[2,8,128], index: 2, kind: output, shape index: {}]  }
   0x1   :  { %9 = vsyncpa [#allocation4 + $0x1], 0 }
   0x2   :  { %10 = vsyncpa [#allocation7], 0 }
   0x3   :  { %12 = vsyncpa [#allocation7 + $0x1], 0 }
   0x4   :  { %13 = vsyncpa [#allocation5], 0 }
   0x5   :  { %15 = vsyncpa [#allocation5 + $0x1], 0  ;;  %s748_s9 = smov 0   ;;  %s750_s10 = smov 0  }
   0x6   :  { %s752_s11 = smov 0   ;;  %s754_s12 = smov 0  }
   0x7   :  { %s756_s13 = smov 0   ;;  %s758_s14 = smov 0  }
   0x8   :  { %s760_s15 = smov 0   ;;  %s762_s16 = smov 0  }
   0x9 LB: > { %s433_s17 = sadd.s32 4294967295, %s725_s16   ;;  %s434_s18 = sadd.s32 4294967294, %s725_s16   ;;  %s725_s16 = sphi %s762_s16, %s21_s16   ;;  %s721_s15 = sphi %s760_s15, %s977_s15   ;;  %s717_s14 = sphi %s758_s14, %s976_s14   ;;  %s713_s13 = sphi %s756_s13, %s946_s13   ;;  %s709_s12 = sphi %s754_s12, %s975_s12   ;;  %s705_s11 = sphi %s752_s11, %s974_s11   ;;  %s701_s10 = sphi %s750_s10, %s973_s10   ;;  %s697_s9 = sphi %s748_s9, %s972_s9  }
   0xa   : > { %s33_s19 = sadd.s32 1, %s721_s15  ;;  %p694_p1 = scmp.ne.s32.totalorder %s713_s13, 0 }
   0xb   : > { %p35_p0 = scmp.ge.s32.totalorder %s33_s19, 2  ;;  %p54_p2 = scmp.eq.s32.totalorder %s725_s16, 0 }
   0xc   : > { %p59_p3 = scmp.ne.s32.totalorder %s713_s13, %s709_s12  ;;  %p60_p5 = scmp.eq.s32.totalorder %s433_s17, 0 }
   0xd   : > { %s979_s19 = smov (%p35_p0, %s33_s19), 0  ;;  %p794_p4 = por %p694_p1, %p54_p2 }
   0xe   : > { %p798_p6 = por %p60_p5, %p59_p3  ;;  %s101_s22 = ssub.s32 %s721_s15, %s979_s19 }
   0xf   : > { %p102_p7 = scmp.eq.s32.totalorder %s101_s22, 0  ;;  %s104_s23 = sadd.s32 1, %s705_s11 }
  0x10   : > { %s962_s21 = scalar_select %p798_p6, 1, 0 }
  0x11   : > { %s806_s24 = scalar_select %p102_p7, %s705_s11, %s104_s23  }
  0x12   : > { %p114_p8 = scmp.ne.s32.totalorder %s705_s11, %s701_s10  ;;  %p115_p9 = scmp.eq.s32.totalorder %s433_s17, 1 }
  0x13   : > { %p120_p10 = scmp.ne.s32.totalorder %s701_s10, %s697_s9  ;;  %p121_p11 = scmp.eq.s32.totalorder %s434_s18, 1 }
  0x14   : > { %p812_p12 = por %p115_p9, %p114_p8  ;;  %p473_p1 = scmp.lt.s32.totalorder %s725_s16, 2 }
  0x15   : > { %p817_p0 = por %p121_p11, %p120_p10  ;;  %s727_s27 = smov [#allocation3]  }
  0x16   : > { %s963_s25 = scalar_select %p812_p12, 1, 0 }
  0x17   : > { %s964_s26 = scalar_select %p817_p0, 1, 0 }
  0x18   : > { %s155_s28 = sshll.u32 %s727_s27, 4  ;;  %p824_p2 = pnand %p473_p1, %p794_p4  ;;  %s156_s28 = int_to_ptr.vmem [resolvable:$true] %s155_s28 }
  0x19   : > { %s558_s4 = scalar_lea.hbm %s956_s0, 256 }
  0x1a   : > { %p559_p3 = scmp.ne.s32.totalorder %s956_s0, %s558_s4  ;;  %p560_p5 = pneg %p824_p2 }
  0x1b   : > { %p565_p8 = scmp.lt.u32.totalorder %s558_s4, %s558_s4  ;;  %p567_p9 = scmp.lt.u32.totalorder %s558_s4, %s956_s0 }
  0x1c   : > { %p561_p7 = pnand %p560_p5, %p559_p3 }
  0x1d   : > { %p568_p10 = por %p567_p9, %p565_p8 }
  0x1e   : > { %p562_p4 = pneg %p561_p7 }
  0x20   : > { %p569_p11 = pnand %p568_p10, %p562_p4 }
  0x22   : > { %572 = shalt.err (!%p569_p11)
}
  0x23   : > { %s573_s12 = scalar_lea.vmem %s156_s28, 256  ;;  %s580_s17 = scalar_lea.vmem %s156_s28, 512 }
  0x24   : > { %p574_p1 = scmp.ne.s32.totalorder %s156_s28, %s573_s12  ;;  %p581_p12 = scmp.lt.s32.totalorder %s156_s28, %s156_s28 }
  0x25   : > { %p582_p6 = scmp.lt.s32.totalorder %s580_s17, %s573_s12 }
  0x26   : > { %p576_p13 = pnand %p574_p1, %p560_p5 }
  0x27   : > { %p583_p3 = por %p582_p6, %p581_p12 }
  0x28   : > { %p577_p0 = pneg %p576_p13 }
  0x2a   : > { %p584_p7 = pnand %p583_p3, %p577_p0 }
  0x2c   : > { %587 = shalt.err (!%p584_p7)
}
  0x2d   : > { %s728_s18 = smov 128   ;;  %s729_s20 = smov 8  }
  0x2e   : > { %465 = dma.hbm_to_vmem [thread:$0]  (!%p824_p2), %s956_s0, 256, %s156_s28, [#allocation4], %s728_s18, %s728_s18, %s729_s20  }
  0x2f   : > { %p443_p13 = scmp.ge.s32.totalorder %s725_s16, 1  ;;  %p187_p4 = scmp.lt.s32.totalorder %s725_s16, 3 }
  0x30   : > { %s730_s30 = smov [#allocation6]   ;;  %s588_s6 = scalar_lea.hbm %s957_s1, 256 }
  0x31   : > { %p855_p8 = pnand %p443_p13, %p187_p4  ;;  %s179_s3 = sshll.u32 %s730_s30, 4  ;;  %s180_s3 = int_to_ptr.vmem [resolvable:$true] %s179_s3 }
  0x32   : > { %p589_p6 = scmp.ne.s32.totalorder %s957_s1, %s588_s6  ;;  %p595_p9 = scmp.lt.u32.totalorder %s588_s6, %s588_s6 }
  0x33   : > { %s966_s27 = scalar_select %p855_p8, 1, 0 }
  0x34   : > { %p591_p12 = pnand %p589_p6, %p560_p5  ;;  %p597_p10 = scmp.lt.u32.totalorder %s588_s6, %s957_s1 }
  0x36   : > { %p592_p0 = pneg %p591_p12  ;;  %p598_p11 = por %p597_p10, %p595_p9 }
  0x38   : > { %p599_p1 = pnand %p598_p11, %p592_p0 }
  0x3a   : > { %602 = shalt.err (!%p599_p1)
}
  0x3b   : > { %s603_s17 = scalar_lea.vmem %s180_s3, 256  ;;  %s610_s22 = scalar_lea.vmem %s180_s3, 512 }
  0x3c   : > { %p604_p3 = scmp.ne.s32.totalorder %s180_s3, %s603_s17  ;;  %p611_p4 = scmp.lt.s32.totalorder %s180_s3, %s180_s3 }
  0x3d   : > { %p612_p8 = scmp.lt.s32.totalorder %s610_s22, %s603_s17 }
  0x3e   : > { %p606_p7 = pnand %p604_p3, %p560_p5 }
  0x3f   : > { %p613_p6 = por %p612_p8, %p611_p4 }
  0x40   : > { %p607_p13 = pneg %p606_p7 }
  0x42   : > { %p614_p12 = pnand %p613_p6, %p607_p13 }
  0x44   : > { %617 = shalt.err (!%p614_p12)
}
  0x45   : > { %468 = dma.hbm_to_vmem [thread:$0]  (!%p824_p2), %s957_s1, 256, %s180_s3, [#allocation7], %s728_s18, %s728_s18, %s729_s20  }
  0x46   : > { %p967_p0 = scmp.ne.s32.totalorder %s966_s27, 0 }
  0x47   : > { %s193_s4 = sand.u32 (!%p967_p0), 1, %s713_s13   ;;  %p968_p5 = scmp.ne.s32.totalorder (!%p967_p0), %s962_s21, 0 }
  0x48   : > { %191 = sbr.rel (%p967_p0) target bundleno = 124 (0x7c), region = 28  ;;  %s444_s5 = sshll.u32 (!%p967_p0), %s193_s4, 4 }
  0x49   : > { %s194_s6 = scalar_lea.sflag (!%p967_p0), [#allocation4], %s193_s4  ;;  %s197_s7 = scalar_lea.vmem (!%p967_p0), [#allocation3], %s444_s5 }
  0x4f   : > { %683 = dma.done.wait (%p968_p5), %s194_s6, 256  }
  0x50   : > { %685 = vsyncadd (%p968_p5), %s194_s6, 4294967040  ;;  %s203_s29 = scalar_lea.sflag [#allocation7], %s193_s4  ;;  %s206_s8 = scalar_lea.vmem [#allocation6], %s444_s5 }
  0x51   : > { %687 = dma.done.wait (%p968_p5), %s203_s29, 256  }
  0x52   : > { %689 = vsyncadd (%p968_p5), %s203_s29, 4294967040  ;;  %v245_v0 = vld [vmem:[%s197_s7] sm:$0xff]  ;;  %v246_v1 = vld [vmem:[%s197_s7 + $0x8] sm:$0xff]  ;;  %v731_v7 = vmov 0.0   ;;  %v298_v19 = vlaneseq  ;;  %s449_s21 = sshll.u32 %s717_s14, 4  ;;  %s229_s18 = sand.u32 1, %s701_s10  }
  0x53   : > { %v247_v2 = vld [vmem:[%s206_s8] sm:$0xff]  ;;  %v248_v3 = vld [vmem:[%s206_s8 + $0x8] sm:$0xff]  ;;  %v265_v4 = vadd.f32 1e-14, %v245_v0  ;;  %v266_v5 = vadd.f32 1e-14, %v246_v1  ;;  %v283_v31 = vmul.f32 %v245_v0, %v245_v0  ;;  %v284_v34 = vmul.f32 %v246_v1, %v246_v1 }
  0x54   : > { %vm249_vm0 = vcmp.eq.f32.partialorder %v247_v2, 1.0  ;;  %vm250_vm1 = vcmp.eq.f32.partialorder %v248_v3, 1.0  ;;  %v275_v6 = vsub.f32 1.0, %v247_v2  ;;  %v259_v9 = vsub.f32 1.0, %v245_v0  ;;  %s446_s20 = sshll.u32 %s229_s18, 3  ;;  %s451_s28 = sshll.u32 %s717_s14, 7 }
  0x55   : > { %v447_v8 = vsel %vm249_vm0, 1.0, %v731_v7  ;;  %v260_v10 = vsub.f32 1.0, %v246_v1  ;;  %v448_v11 = vsel %vm250_vm1, 1.0, %v731_v7  ;;  %550 = vlog2.f32 %v265_v4  ;;  %s231_s27 = scalar_lea.vmem [#allocation8], %s446_s20  ;;  %s903_s22 = scalar_lea.hbm %s958_s2, %s451_s28 }
  0x56   : > { %552 = vlog2.f32 %v266_v5  ;;  %v276_v12 = vsub.f32 1.0, %v248_v3  ;;  %v255_v13 = vsub.f32 1.0, %v447_v8  ;;  %v277_v14 = vmul.f32 %v275_v6, %v275_v6  ;;  %s332_s3 = sshll.u32 %s231_s27, 4  ;;  %s319_s23 = scalar_lea.sflag [#allocation5], %s229_s18  ;;  %s898_s3 = int_to_ptr.vmem [resolvable:$true] %s332_s3 }
  0x57   : > { %v256_v15 = vsub.f32 1.0, %v448_v11  ;;  %v287_v17 = vadd.f32 1e-14, %v259_v9  ;;  %v288_v18 = vadd.f32 1e-14, %v260_v10  ;;  %v257_v24 = vsub.f32 0.0, %v447_v8 }
  0x58   : > { %v278_v16 = vmul.f32 %v276_v12, %v276_v12  ;;  %v273_v20 = vsub.f32 0.0, %v255_v13  ;;  %v279_v21 = vmul.f32 %v277_v14, %v277_v14  ;;  %v261_v25 = vmul.f32 %v259_v9, %v259_v9  ;;  %s618_s30 = scalar_lea.vmem %s898_s3, 128  ;;  %p969_p8 = scmp.ne.s32.totalorder %s963_s25, 0 }
  0x59   : > { %554 = vlog2.f32 %v287_v17  ;;  %v274_v22 = vsub.f32 0.0, %v256_v15  ;;  %v299_v26 = vshrl.u32 %v298_v19, 7  ;;  %v258_v27 = vsub.f32 0.0, %v448_v11  ;;  %p619_p2 = scmp.ne.s32.totalorder %s898_s3, %s618_s30  ;;  %s732_s14 = smov [#allocation8]  }
  0x5a   : > { %556 = vlog2.f32 %v288_v18  ;;  %v280_v23 = vmul.f32 %v278_v16, %v278_v16  ;;  %v262_v28 = vmul.f32 %v260_v10, %v260_v10  ;;  %v281_v30 = vmul.f32 %v279_v21, %v273_v20  ;;  %s622_s4 = sshll.u32 %s732_s14, 4  ;;  %s623_s4 = int_to_ptr.vmem [resolvable:$false] %s622_s4 }
  0x5b   : > { %v263_v35 = vmul.f32 %v261_v25, %v257_v24  ;;  %v300_v37 = vadd.s32 8, %v299_v26  ;;  %v302_v38 = vstv %s449_s21  ;;  %p620_p9 = pnand %p619_p2, %p969_p8  ;;  %s624_s5 = scalar_lea.vmem %s623_s4, 256 }
  0x5c   : > { %v282_v33 = vmul.f32 %v280_v23, %v274_v22  ;;  %v264_v39 = vmul.f32 %v262_v28, %v258_v27  ;;  %v285_v41 = vmul.f32 %v283_v31, %v281_v30  ;;  %v303_v44 = vadd.s32 %v302_v38, %v299_v26  ;;  %p625_p11 = scmp.lt.s32.totalorder %s898_s3, %s623_s4  ;;  %p626_p1 = scmp.lt.s32.totalorder %s624_s5, %s618_s30 }
  0x5d   : > { %v304_v48 = vadd.s32 %v302_v38, %v300_v37  ;;  %p621_p10 = pneg %p620_p9 }
  0x5e   : > { %v286_v43 = vmul.f32 %v284_v34, %v282_v33  ;;  %vm305_vm2 = vcmp.lt.s32.totalorder %v303_v44, 16  ;;  %p627_p3 = por %p626_p1, %p625_p11 }
  0x5f   : > { %v551_v29 = vpop.eup %550  ;;  %vm306_vm3 = vcmp.lt.s32.totalorder %v304_v48, 16 }
  0x60   : > { %v553_v32 = vpop.eup %552  ;;  %v268_v36 = vmul.f32 0.6931472, %v551_v29  ;;  %p628_p7 = pnand %p627_p3, %p621_p10 }
  0x61   : > { %v270_v40 = vmul.f32 0.6931472, %v553_v32 }
  0x62   : > { %v271_v46 = vmul.f32 %v268_v36, %v263_v35 }
  0x63   : > { %v555_v42 = vpop.eup %554  ;;  %v272_v49 = vmul.f32 %v270_v40, %v264_v39 }
  0x64   : > { %v557_v45 = vpop.eup %556  ;;  %v290_v47 = vmul.f32 0.6931472, %v555_v42 }
  0x65   : > { %v292_v50 = vmul.f32 0.6931472, %v557_v45 }
  0x66   : > { %v293_v51 = vmul.f32 %v290_v47, %v285_v41 }
  0x67   : > { %v294_v52 = vmul.f32 %v292_v50, %v286_v43 }
  0x68   : > { %v295_v53 = vadd.f32 %v293_v51, %v271_v46 }
  0x69   : > { %v296_v54 = vadd.f32 %v294_v52, %v272_v49 }
  0x6a   : > { %v307_v55 = vsel %vm305_vm2, %v295_v53, 0.0 }
  0x6b   : > { %v308_v56 = vsel %vm306_vm3, %v296_v54, 0.0 }
  0x6c   : > { %v310_v57 = vadd.f32 %v308_v56, %v307_v55 }
  0x6e   : > { %317 = vst [vmem:[%s231_s27] sm:$0xff] %v310_v57 }
  0x6f   : > { %631 = shalt.err (!%p628_p7)
}
  0x70   : > { %s632_s6 = scalar_lea.hbm %s903_s22, 128  ;;  %s636_s8 = scalar_lea.hbm %s958_s2, 256 }
  0x71   : > { %p633_p13 = scmp.ne.s32.totalorder %s903_s22, %s632_s6  ;;  %p637_p12 = scmp.lt.u32.totalorder %s903_s22, %s958_s2 }
  0x72   : > { %p638_p0 = scmp.lt.u32.totalorder %s636_s8, %s632_s6  ;;  %p640_p2 = scmp.lt.u32.totalorder %s632_s6, %s903_s22 }
  0x73   : > { %p634_p4 = pnand %p633_p13, %p969_p8 }
  0x74   : > { %p639_p5 = por %p638_p0, %p637_p12 }
  0x75   : > { %p635_p6 = pneg %p634_p4 }
  0x76   : > { %p641_p9 = por %p640_p2, %p639_p5 }
  0x78   : > { %p642_p10 = pnand %p641_p9, %p635_p6 }
  0x7a   : > { %645 = shalt.err (!%p642_p10)
}
  0x7b   : > { %460 = dma.vmem_to_hbm [thread:$0]  (%p969_p8), %s898_s3, 128, %s903_s22, %s319_s23  }
  0x7c PF: > { %s344_s20 = sand.u32 1, %s697_s9   ;;  %p970_p11 = scmp.ne.s32.totalorder %s964_s26, 0 }
  0x7d   : > { %p971_p1 = scmp.ge.s32.totalorder %s725_s16, 2  ;;  %s345_s27 = scalar_lea.sflag [#allocation5], %s344_s20 }
  0x7f   : > { %p470_p3 = pnand %p971_p1, %p970_p11 }
  0x81   : > { %691 = dma.done.wait (!%p470_p3), %s345_s27, 128  }
  0x82   : > { %693 = vsyncadd (!%p470_p3), %s345_s27, 4294967168  ;;  %s21_s16 = sadd.s32 1, %s725_s16   ;;  %s972_s9 = smov %s701_s10 }
  0x83   : > { %p18_p7 = scmp.ge.s32.totalorder %s21_s16, 4   ;;  %s973_s10 = smov %s705_s11 }
  0x84   : > { %s974_s11 = smov %s806_s24  ;;  %s975_s12 = smov %s713_s13 }
  0x85   : > { %s946_s13 = smov 0   ;;  %s976_s14 = smov %s721_s15 }
  0x86   : > { %s977_s15 = smov %s979_s19  ;;  %20 = sbr.rel (!%p18_p7) target bundleno = 9 (0x9), region = 94 }
  0x8d   :  { %350 = vsyncpa [#allocation4], 1 }
  0x8e   :  { %352 = vsyncpa [#allocation4 + $0x1], 1 }
  0x8f   :  { %353 = vsyncpa [#allocation7], 1 }
  0x90   :  { %355 = vsyncpa [#allocation7 + $0x1], 1 }
  0x91   :  { %356 = vsyncpa [#allocation5], 1 }
  0x92   :  { %358 = vsyncpa [#allocation5 + $0x1], 1 }

</bundles_post_ra>
